<compile_context>
chip_gen: v5e
topology: v5e:2x2
jax: 0.10.0
libtpu: 0.0.40
codegen_flags: <defaults>
</compile_context>

<pallas_src>
import functools

import jax
import jax.numpy as jnp
from jax.experimental import pallas as pl
from jax.experimental.pallas import tpu as pltpu

_LANE = 128


def _round_up(n, m):
    return -(-int(n) // int(m)) * int(m)


def _sublane_pack(itemsize):
    # Sub-32-bit dtypes pack along sublanes: 8 rows (f32), 16 (bf16), 32 (i8).
    return max(8, 32 // max(int(itemsize), 1))


def _vmem_capacity_bytes():
    """Best-effort physical VMEM size; conservative (v7x, 64 MiB) fallback."""
    try:
        info = pltpu.get_tpu_info()
        cap = getattr(info, "vmem_capacity_bytes", None)
        if cap:
            return int(cap)
    except Exception:
        pass
    return 64 << 20


def _budgets():
    """Generation-aware (buffer-set budget, vmem_limit cap, min pallas bytes)."""
    cap = _vmem_capacity_bytes()
    if cap >= (100 << 20):
        # 128 MiB VMEM parts (v5e / v6e): spend VMEM on big contiguous DMAs.
        return 24 << 20, 100 << 20, 1 << 20
    # 64 MiB per-TC parts (v7x-class): keep headroom for Mosaic scratch.
    return 7 << 20, 48 << 20, 8 << 20


def _block_set_bytes(bc_tile, tf, n_bins, sections, itemsize):
    """VMEM bytes of ONE buffer set (input block + all output blocks).

    Accounts for sublane padding of every per-section output block and lane
    padding of the frame tile; Pallas double-buffers, so real footprint ~2x.
    """
    pack = _sublane_pack(itemsize)
    tf_pad = _round_up(tf, _LANE)
    rows = _round_up(n_bins, pack) + sum(_round_up(s, pack) for s in sections)
    return bc_tile * rows * tf_pad * itemsize


def _band_split_kernel(x_ref, *out_refs, sections):
    """Copy static bands of the bins (sublane) axis into separate outputs."""
    # TODO(synk): section starts that are not multiples of the sublane pack
    # cost an (otherwise hidden) XLU relayout and padded output rows; align
    # section sizes to 8 (f32) / 16 (bf16) at the model level where possible.
    start = 0
    for sec, o_ref in zip(sections, out_refs):
        o_ref[...] = x_ref[:, start:start + sec, :]
        start += sec


def _band_split_reference(x, sections):
    outs, start = [], 0
    for sec in sections:
        outs.append(x[:, :, start:start + sec, :])
        start += sec
    return tuple(outs)


def band_split(x, sections, dim=2, use_pallas=None):
    """Pallas equivalent of BandSplit(sections, dim=2).forward(x).

    Args:
      x: (batch, channels, n_bins, n_frames) array.
      sections: tuple of ints summing to n_bins.
      dim: must be 2 (the n_bins axis), matching the module default.
      use_pallas: force (True) / skip (False) the Pallas path; None = auto.

    Returns:
      tuple of arrays (batch, channels, sections[i], n_frames).
    """
    # TODO(synk): only the module-default dim=2 (n_bins axis) is implemented.
    assert dim == 2, "kernel implements the module default dim=2 (n_bins axis)"
    sections = tuple(int(s) for s in sections)
    b, c, n_bins, n_frames = x.shape
    assert sum(sections) == n_bins, "sections must sum to n_bins"

    itemsize = jnp.dtype(x.dtype).itemsize
    total_bytes = x.size * itemsize
    budget, vmem_cap_limit, min_pallas_bytes = _budgets()

    if use_pallas is None:
        use_pallas = total_bytes >= min_pallas_bytes
    if not use_pallas:
        return _band_split_reference(x, sections)

    bc = b * c
    x3 = x.reshape(bc, n_bins, n_frames)  # free (contiguous) reshape in HBM

    def fits(bct, tf):
        return _block_set_bytes(bct, tf, n_bins, sections, itemsize) <= budget

    # ---- frame tile: prefer full-frame rows (max contiguous DMA, fewest
    # steps); otherwise fixed 128-multiple tiles with a partial boundary block.
    if n_frames <= _LANE or fits(1, n_frames):
        tf = n_frames
    else:
        per_lane = max(
            1, _block_set_bytes(1, _LANE, n_bins, sections, itemsize) // _LANE)
        tf = max(_LANE, ((budget // per_lane) // _LANE) * _LANE)
        tf = min(tf, _round_up(n_frames, _LANE))

    # ---- bc tile: as large as the budget allows; no divisor requirement.
    per_bc_row = max(1, _block_set_bytes(1, tf, n_bins, sections, itemsize))
    bc_tile = int(max(1, min(bc, budget // per_bc_row)))

    # ---- guarantee >= 2 grid steps on a parallel axis so megacore parts
    # (v7x, 2 TCs) can shard the copy instead of serializing on one core.
    if pl.cdiv(bc, bc_tile) == 1 and pl.cdiv(n_frames, tf) == 1:
        if bc >= 2:
            bc_tile = pl.cdiv(bc, 2)
        elif n_frames > _LANE:
            tf = max(_LANE, _round_up(pl.cdiv(n_frames, 2), _LANE))

    grid = (pl.cdiv(bc, bc_tile), pl.cdiv(n_frames, tf))

    in_specs = [pl.BlockSpec((bc_tile, n_bins, tf), lambda i, j: (i, 0, j))]
    out_specs = tuple(
        pl.BlockSpec((bc_tile, sec, tf), lambda i, j: (i, 0, j))
        for sec in sections
    )
    out_shapes = tuple(
        jax.ShapeDtypeStruct((bc, sec, n_frames), x.dtype) for sec in sections
    )

    block_set = _block_set_bytes(bc_tile, tf, n_bins, sections, itemsize)
    # Double-buffered footprint + headroom, capped per generation.
    vmem_limit = int(min(max(2 * block_set + (4 << 20), 16 << 20),
                         vmem_cap_limit))

    kernel = functools.partial(_band_split_kernel, sections=sections)

    outs = pl.pallas_call(
        kernel,
        out_shape=out_shapes,
        grid=grid,
        in_specs=in_specs,
        out_specs=out_specs,
        compiler_params=pltpu.CompilerParams(
            dimension_semantics=("parallel", "parallel"),
            vmem_limit_bytes=vmem_limit,
        ),
        cost_estimate=pl.CostEstimate(
            flops=0,
            transcendentals=0,
            bytes_accessed=2 * total_bytes,  # read everything + write everything
        ),
    )(x3)

    return tuple(o.reshape(b, c, sec, n_frames) for o, sec in zip(outs, sections))


if __name__ == "__main__":
    key = jax.random.PRNGKey(0)
    batch, channels, n_bins, n_frames = 2, 4, 16, 128  # lane-dense frame dim
    sections = (4, 6, 6)  # sums to n_bins = 16

    x = jax.random.normal(key, (batch, channels, n_bins, n_frames), jnp.float32)

    # Force the Pallas path even at this small demo size so the kernel runs.
    outs = band_split(x, sections, dim=2, use_pallas=True)
    outs = jax.block_until_ready(outs)

    # Reference check against plain JAX slicing (== torch.split semantics).
    refs = _band_split_reference(x, sections)
    assert len(outs) == len(sections)
    for sec, o, r in zip(sections, outs, refs):
        assert o.shape == (batch, channels, sec, n_frames)
        assert jnp.array_equal(o, r)

    print("KERNEL_OK")
</pallas_src>

<mosaic_0001>
module attributes {stable_mosaic.version = 11 : i64} {
  func.func @_band_split_kernel(%arg0: i32, %arg1: i32, %arg2: memref<4x16x128xf32, #tpu.memory_space<vmem>>, %arg3: memref<4x4x128xf32, #tpu.memory_space<vmem>>, %arg4: memref<4x6x128xf32, #tpu.memory_space<vmem>>, %arg5: memref<4x6x128xf32, #tpu.memory_space<vmem>>) attributes {dimension_semantics = [#tpu.dimension_semantics<parallel>, #tpu.dimension_semantics<parallel>], iteration_bounds = array<i64: 2, 1>, scalar_prefetch = 0 : i64, scratch_operands = 0 : i64, tpu.core_type = #tpu.core_type<tc>, window_params = [{transform_indices = @transform_0, window_bounds = array<i64: 4, 16, 128>}, {transform_indices = @transform_1, window_bounds = array<i64: 4, 4, 128>}, {transform_indices = @transform_2, window_bounds = array<i64: 4, 6, 128>}, {transform_indices = @transform_3, window_bounds = array<i64: 4, 6, 128>}]} {
    %c0 = arith.constant 0 : index
    %c0_0 = arith.constant 0 : index
    %c0_1 = arith.constant 0 : index
    %0 = vector.load %arg2[%c0, %c0_0, %c0_1] : memref<4x16x128xf32, #tpu.memory_space<vmem>>, vector<4x4x128xf32>
    %c0_2 = arith.constant 0 : index
    %c0_3 = arith.constant 0 : index
    %c0_4 = arith.constant 0 : index
    %1 = vector.load %arg3[%c0_2, %c0_3, %c0_4] : memref<4x4x128xf32, #tpu.memory_space<vmem>>, vector<4x4x128xf32>
    tpu.vector_store %arg3[%c0_2, %c0_3, %c0_4], %0 {strides = array<i32>} : memref<4x4x128xf32, #tpu.memory_space<vmem>>, vector<4x4x128xf32>,
    %c0_5 = arith.constant 0 : index
    %c4 = arith.constant 4 : index
    %c0_6 = arith.constant 0 : index
    %2 = vector.load %arg2[%c0_5, %c4, %c0_6] : memref<4x16x128xf32, #tpu.memory_space<vmem>>, vector<4x6x128xf32>
    %c0_7 = arith.constant 0 : index
    %c0_8 = arith.constant 0 : index
    %c0_9 = arith.constant 0 : index
    %3 = vector.load %arg4[%c0_7, %c0_8, %c0_9] : memref<4x6x128xf32, #tpu.memory_space<vmem>>, vector<4x6x128xf32>
    tpu.vector_store %arg4[%c0_7, %c0_8, %c0_9], %2 {strides = array<i32>} : memref<4x6x128xf32, #tpu.memory_space<vmem>>, vector<4x6x128xf32>,
    %c0_10 = arith.constant 0 : index
    %c10 = arith.constant 10 : index
    %c0_11 = arith.constant 0 : index
    %4 = vector.load %arg2[%c0_10, %c10, %c0_11] : memref<4x16x128xf32, #tpu.memory_space<vmem>>, vector<4x6x128xf32>
    %c0_12 = arith.constant 0 : index
    %c0_13 = arith.constant 0 : index
    %c0_14 = arith.constant 0 : index
    %5 = vector.load %arg5[%c0_12, %c0_13, %c0_14] : memref<4x6x128xf32, #tpu.memory_space<vmem>>, vector<4x6x128xf32>
    tpu.vector_store %arg5[%c0_12, %c0_13, %c0_14], %4 {strides = array<i32>} : memref<4x6x128xf32, #tpu.memory_space<vmem>>, vector<4x6x128xf32>,
    return
  }
  func.func @transform_0(%arg0: i32, %arg1: i32) -> (i32, i32, i32) {
    %c0_i32 = arith.constant 0 : i32
    %c0_i32_0 = arith.constant 0 : i32
    return %arg0, %c0_i32, %arg1 : i32, i32, i32
  }
  func.func @transform_1(%arg0: i32, %arg1: i32) -> (i32, i32, i32) {
    %c0_i32 = arith.constant 0 : i32
    %c0_i32_0 = arith.constant 0 : i32
    return %arg0, %c0_i32, %arg1 : i32, i32, i32
  }
  func.func @transform_2(%arg0: i32, %arg1: i32) -> (i32, i32, i32) {
    %c0_i32 = arith.constant 0 : i32
    %c0_i32_0 = arith.constant 0 : i32
    return %arg0, %c0_i32, %arg1 : i32, i32, i32
  }
  func.func @transform_3(%arg0: i32, %arg1: i32) -> (i32, i32, i32) {
    %c0_i32 = arith.constant 0 : i32
    %c0_i32_0 = arith.constant 0 : i32
    return %arg0, %c0_i32, %arg1 : i32, i32, i32
  }
}

</mosaic_0001>

<bundles_post_ra>
// kernel: tpu_custom_call.1
= control target key start
LH: loop header
LB: loop body
LE: loop exit
PB: predicated region body
PF: predicated region fallthrough
CT: control target
= control target key end

     0   :  { %9 = vsyncpa [#allocation3], 0  ;;  %s849_s0 = inlined_call_operand.hbm [shape: f32[8,16,128], index: 0, kind: input, shape index: {}]   ;;  %s850_s1 = inlined_call_operand.hbm [shape: f32[8,4,128], index: 1, kind: output, shape index: {0}]   ;;  %s851_s2 = inlined_call_operand.vmem [shape: f32[8,6,128], index: 2, kind: output, shape index: {1}]   ;;  %s852_s3 = inlined_call_operand.vmem [shape: f32[8,6,128], index: 3, kind: output, shape index: {2}]  }
   0x1   :  { %11 = vsyncpa [#allocation3 + $0x1], 0 }
   0x2   :  { %12 = vsyncpa [#allocation4], 0 }
   0x3   :  { %14 = vsyncpa [#allocation4 + $0x1], 0  ;;  %s695_s12 = smov 0   ;;  %s697_s13 = smov 0  }
   0x4   :  { %s699_s14 = smov 0   ;;  %s701_s15 = smov 0  }
   0x5   :  { %s703_s16 = smov 0   ;;  %s705_s17 = smov 0  }
   0x6 LB: > { %s468_s18 = sadd.s32 4294967295, %s669_s17   ;;  %s469_s19 = sadd.s32 4294967294, %s669_s17   ;;  %s669_s17 = sphi %s705_s17, %s20_s17   ;;  %s665_s16 = sphi %s703_s16, %s861_s16   ;;  %s661_s15 = sphi %s701_s15, %s860_s15   ;;  %s657_s14 = sphi %s699_s14, %s859_s14   ;;  %s653_s13 = sphi %s697_s13, %s858_s13   ;;  %s649_s12 = sphi %s695_s12, %s857_s12  }
   0x7   : > { %s32_s20 = sadd.s32 1, %s665_s16  ;;  %s41_s21 = sadd.s32 1, %s657_s14 }
   0x8   : > { %p34_p0 = scmp.ge.s32.totalorder %s32_s20, 2  ;;  %p48_p1 = scmp.ne.s32.totalorder %s657_s14, %s653_s13 }
   0x9   : > { %p49_p2 = scmp.eq.s32.totalorder %s669_s17, 0  ;;  %p54_p3 = scmp.ne.s32.totalorder %s653_s13, %s649_s12 }
   0xa   : > { %s863_s20 = smov (%p34_p0, %s32_s20), 0  ;;  %p55_p5 = scmp.eq.s32.totalorder %s468_s18, 0 }
   0xb   : > { %p736_p4 = por %p49_p2, %p48_p1  ;;  %s36_s23 = ssub.s32 %s665_s16, %s863_s20 }
   0xc   : > { %p80_p6 = scmp.eq.s32.totalorder %s468_s18, 1  ;;  %p39_p7 = scmp.eq.s32.totalorder %s36_s23, 0 }
   0xd   : > { %p742_p8 = por %p55_p5, %p54_p3  ;;  %p86_p10 = scmp.eq.s32.totalorder %s469_s19, 1 }
   0xe   : > { %p746_p9 = por %p80_p6, %p48_p1  ;;  %p471_p12 = scmp.ge.s32.totalorder %s669_s17, 2 }
   0xf   : > { %s751_s26 = scalar_select %p39_p7, %s657_s14, %s41_s21  }
  0x10   : > { %p753_p11 = por %p86_p10, %p54_p3  ;;  %p503_p13 = scmp.lt.s32.totalorder %s669_s17, 2 }
  0x11   : > { %s162_s28 = sand.u32 1, %s657_s14   ;;  %s489_s30 = sshll.u32 %s665_s16, 6 }
  0x12   : > { %s472_s29 = sshll.u32 %s162_s28, 6  ;;  %s173_s6 = scalar_lea.hbm %s849_s0, %s489_s30 }
  0x13   : > { %s166_s7 = scalar_lea.vmem [#allocation2], %s472_s29  ;;  %s174_s9 = sshll.u32 %s173_s6, 4  ;;  %s175_s9 = int_to_ptr.hbm [resolvable:$true] %s174_s9 }
  0x14   : > { %s176_s8 = sshll.u32 %s166_s7, 4  ;;  %p496_p0 = pnand %p503_p13, %p736_p4  ;;  %s177_s8 = int_to_ptr.vmem [resolvable:$true] %s176_s8 }
  0x15   : > { %p476_p1 = scmp.ge.s32.totalorder %s669_s17, 1  ;;  %s163_s10 = scalar_lea.sflag [#allocation3], %s162_s28 }
  0x16   : > { %s671_s11 = smov 128   ;;  %s672_s18 = smov 8  }
  0x17   : > { %498 = dma.hbm_to_vmem [thread:$0]  (!%p496_p0), %s175_s9, 1024, %s177_s8, %s163_s10, %s671_s11, %s671_s11, %s672_s18  }
  0x18   : > { %p184_p2 = scmp.lt.s32.totalorder %s669_s17, 3 }
  0x1a   : > { %p185_p3 = pnand %p476_p1, %p184_p2 }
  0x1b   : > { %s769_s19 = sand.u32 (!%p185_p3), 1, %s653_s13  }
  0x1c   : > { %188 = sbr.rel (%p185_p3) target bundleno = 54 (0x36), region = 24  ;;  %s477_s21 = sshll.u32 (!%p185_p3), %s769_s19, 6 }
  0x1d   : > { %s191_s23 = scalar_lea.sflag (!%p185_p3), [#allocation3], %s769_s19  ;;  %s773_s29 = scalar_lea.vmem (!%p185_p3), [#allocation2], %s477_s21 }
  0x21   : > { %640 = dma.done.wait (%p742_p8), %s191_s23, 1024  }
  0x22   : > { %642 = vsyncadd (%p742_p8), %s191_s23, 4294966272  ;;  %s479_s22 = sshll.u32 %s661_s15, 2  ;;  %s478_s28 = sshll.u32 %s769_s19, 4  ;;  %v262_v0 = vld [vmem:[%s773_s29 + $0x4] sm:$0x3f] }
  0x23   : > { %p237_p4 = scmp.lt.s32.totalorder %s479_s22, 7  ;;  %s490_s4 = sshll.u32 %s661_s15, 4  ;;  %v270_v1 = vld [vmem:[%s773_s29 + $0xa] sm:$0x3f]  ;;  %v263_v2 = vld [vmem:[%s773_s29 + $0x14] sm:$0x3f] }
  0x24   : > { %v271_v3 = vld [vmem:[%s773_s29 + $0x1a] sm:$0x3f]  ;;  %v254_v4 = vld [vmem:[%s773_s29] sm:$0xf]  ;;  %v255_v5 = vld [vmem:[%s773_s29 + $0x10] sm:$0xf]  ;;  %s307_s11 = scalar_lea.hbm %s850_s1, %s490_s4 }
  0x25   : > { %s865_s22 = smov (!%p237_p4, %s479_s22), 7  ;;  %v256_v6 = vld [vmem:[%s773_s29 + $0x20] sm:$0xf]  ;;  %s213_s18 = scalar_lea.vmem [#allocation5], %s478_s28  ;;  %v257_v7 = vld [vmem:[%s773_s29 + $0x30] sm:$0xf] }
  0x26   : > { %s480_s30 = sshll.u32 %s865_s22, 3  ;;  %258 = vst [vmem:[%s213_s18] sm:$0xf] %v254_v4  ;;  %s308_s21 = sshll.u32 %s213_s18, 4  ;;  %v264_v8 = vld [vmem:[%s773_s29 + $0x24] sm:$0x3f]  ;;  %s309_s21 = int_to_ptr.vmem [resolvable:$true] %s308_s21 }
  0x27   : > { %s785_s24 = scalar_lea.vmem %s851_s2, %s480_s30  ;;  %s790_s9 = scalar_lea.vmem %s852_s3, %s480_s30  ;;  %259 = vst [vmem:[%s213_s18 + $0x4] sm:$0xf] %v255_v5  ;;  %v272_v9 = vld [vmem:[%s773_s29 + $0x2a] sm:$0x3f]  ;;  %v265_v10 = vld [vmem:[%s773_s29 + $0x34] sm:$0x3f] }
  0x28   : > { %266 = vst [vmem:[%s785_s24] sm:$0x3f] %v262_v0  ;;  %s310_s23 = sshll.u32 %s307_s11, 4  ;;  %v273_v11 = vld [vmem:[%s773_s29 + $0x3a] sm:$0x3f]  ;;  %s279_s22 = scalar_lea.sflag [#allocation4], %s769_s19  ;;  %s311_s23 = int_to_ptr.hbm [resolvable:$true] %s310_s23 }
  0x29   : > { %274 = vst [vmem:[%s790_s9] sm:$0x3f] %v270_v1  ;;  %s601_s28 = sshra.s32 %s311_s23, 4  ;;  %s607_s6 = scalar_lea.hbm %s850_s1, 32  ;;  %s602_s28 = int_to_ptr.hbm [resolvable:$true] %s601_s28 }
  0x2a   : > { %267 = vst [vmem:[%s785_s24 + $0x8] sm:$0x3f] %v263_v2  ;;  %s603_s30 = scalar_lea.hbm %s602_s28, 16  ;;  %p608_p8 = scmp.lt.s32.totalorder %s602_s28, %s850_s1 }
  0x2b   : > { %275 = vst [vmem:[%s790_s9 + $0x8] sm:$0x3f] %v271_v3  ;;  %p604_p5 = scmp.ne.s32.totalorder %s602_s28, %s603_s30  ;;  %p609_p10 = scmp.lt.s32.totalorder %s607_s6, %s603_s30 }
  0x2c   : > { %260 = vst [vmem:[%s213_s18 + $0x8] sm:$0xf] %v256_v6 }
  0x2d   : > { %261 = vst [vmem:[%s213_s18 + $0xc] sm:$0xf] %v257_v7  ;;  %p605_p6 = pnand %p604_p5, %p746_p9  ;;  %p610_p13 = por %p609_p10, %p608_p8 }
  0x2e   : > { %268 = vst [vmem:[%s785_s24 + $0x10] sm:$0x3f] %v264_v8 }
  0x2f   : > { %276 = vst [vmem:[%s790_s9 + $0x10] sm:$0x3f] %v272_v9  ;;  %p606_p7 = pneg %p605_p6 }
  0x30   : > { %269 = vst [vmem:[%s785_s24 + $0x18] sm:$0x3f] %v265_v10 }
  0x31   : > { %277 = vst [vmem:[%s790_s9 + $0x18] sm:$0x3f] %v273_v11  ;;  %p611_p0 = pnand %p610_p13, %p606_p7 }
  0x33   : > { %614 = shalt.err (!%p611_p0)
}
  0x34   : > { %s673_s19 = smov 64   ;;  %s674_s29 = smov 4  }
  0x35   : > { %493 = dma.vmem_to_hbm [thread:$0]  (%p746_p9), %s309_s21, 256, %s311_s23, %s279_s22, %s673_s19, %s673_s19, %s674_s29  }
  0x36 PF: > { %s333_s24 = sand.u32 1, %s649_s12   ;;  %p500_p1 = pnand %p471_p12, %p753_p11 }
  0x37   : > { %s334_s9 = scalar_lea.sflag [#allocation4], %s333_s24 }
  0x38   : > { %p501_p2 = pneg %p500_p1 }
  0x3a   : > { %644 = dma.done.wait (%p501_p2), %s334_s9, 256  }
  0x3b   : > { %646 = vsyncadd (%p501_p2), %s334_s9, 4294967040  ;;  %s20_s17 = sadd.s32 1, %s669_s17   ;;  %s857_s12 = smov %s653_s13 }
  0x3c   : > { %p17_p3 = scmp.ge.s32.totalorder %s20_s17, 4   ;;  %s858_s13 = smov %s657_s14 }
  0x3d   : > { %s859_s14 = smov %s751_s26  ;;  %s860_s15 = smov %s665_s16 }
  0x3e   : > { %s861_s16 = smov %s863_s20  ;;  %19 = sbr.rel (!%p17_p3) target bundleno = 6 (0x6), region = 93 }
  0x43   :  { %362 = vsyncpa [#allocation3], 1 }
  0x44   :  { %364 = vsyncpa [#allocation3 + $0x1], 1 }
  0x45   :  { %365 = vsyncpa [#allocation4], 1 }
  0x46   :  { %367 = vsyncpa [#allocation4 + $0x1], 1 }

</bundles_post_ra>
